<compile_context>
chip_gen: v5e
topology: v5e:2x2
jax: 0.10.0
libtpu: 0.0.40
codegen_flags: <defaults>
</compile_context>

<pallas_src>
import jax
import jax.numpy as jnp
from jax.experimental import pallas as pl
from jax.experimental.pallas import tpu as pltpu


def _gate_kernel(x_ref, w_ref, b_ref, y_ref):
    """One token tile: y = x @ W_eff + b_eff (f32 accumulate, lane-dense store)."""
    acc = jnp.dot(x_ref[...], w_ref[...], preferred_element_type=jnp.float32)
    y_ref[...] = (acc + b_ref[...]).astype(y_ref.dtype)


def multi_layer_gate(x, params, *, tm_max=1024):
    """params = (w1, b1, w2, b2, w3, b3, wc, bc); returns (x_out, gate_logit).

    Weights are stored (in_dim, out_dim); biases as (1, out_dim) rows.
    """
    w1, b1, w2, b2, w3, b3, wc, bc = params
    n, d_in = x.shape
    d_out = w3.shape[1]
    class_dim = wc.shape[1]

    # ---- fold the activation-free chain into a single affine map (trace time) ----
    f32 = jnp.float32
    w3c = jnp.concatenate([w3, wc], axis=1).astype(f32)          # (h2, d_out+class_dim)
    b3c = jnp.concatenate([b3, bc], axis=1).astype(f32)          # (1,  d_out+class_dim)
    w12 = w1.astype(f32) @ w2.astype(f32)                        # (d_in, h2)
    w_eff = w12 @ w3c                                            # (d_in, d_out+class_dim)
    b_eff = (b1.astype(f32) @ w2.astype(f32) + b2.astype(f32)) @ w3c + b3c

    # ---- pad output lanes to a multiple of 128 -> unmasked lane-dense stores ----
    n_cols = d_out + class_dim
    cols_pad = -(-n_cols // 128) * 128
    w_eff = jnp.pad(w_eff, ((0, 0), (0, cols_pad - n_cols))).astype(x.dtype)
    b_eff = jnp.pad(b_eff, ((0, 0), (0, cols_pad - n_cols))).astype(x.dtype)

    # ---- grid over the token axis; pad rows so every grid step is a full tile ----
    tm = min(tm_max, max(n, 8))
    tm = -(-tm // 8) * 8                      # sublane-aligned tile height
    n_pad = -(-n // tm) * tm
    x_p = x if n_pad == n else jnp.pad(x, ((0, n_pad - n), (0, 0)))

    y = pl.pallas_call(
        _gate_kernel,
        out_shape=jax.ShapeDtypeStruct((n_pad, cols_pad), x.dtype),
        grid=(n_pad // tm,),
        in_specs=[
            pl.BlockSpec((tm, d_in), lambda i: (i, 0)),        # token tile, pipelined
            pl.BlockSpec((d_in, cols_pad), lambda i: (0, 0)),  # W_eff: VMEM-resident
            pl.BlockSpec((1, cols_pad), lambda i: (0, 0)),     # b_eff: VMEM-resident
        ],
        out_specs=pl.BlockSpec((tm, cols_pad), lambda i: (i, 0)),
        compiler_params=pltpu.CompilerParams(
            dimension_semantics=("parallel",)),                # v7x: shard across 2 TCs
    )(x_p, w_eff, b_eff)

    x_out = y[:n, :d_out]
    gate_logit = y[:n, d_out:n_cols]
    return x_out, gate_logit


def _init_linear(key, d_in, d_out, dtype=jnp.float32):
    """Deterministic Linear init (uniform +/- 1/sqrt(fan_in), like PyTorch)."""
    kw, kb = jax.random.split(key)
    bound = 1.0 / (d_in ** 0.5)
    w = jax.random.uniform(kw, (d_in, d_out), dtype, minval=-bound, maxval=bound)
    b = jax.random.uniform(kb, (1, d_out), dtype, minval=-bound, maxval=bound)
    return w, b


def _reference(x, params):
    """Pure-JAX layer-by-layer reference mirroring MultiLayerGate.forward exactly."""
    w1, b1, w2, b2, w3, b3, wc, bc = params
    h1 = x @ w1 + b1                    # gate_layers[0]
    h2 = h1 @ w2 + b2                   # gate_layers[1]  -> last_hidden_output
    x_out = h2 @ w3 + b3                # gate_layers[2]  -> final x
    gate_logit = h2 @ wc + bc           # class_head(last_hidden_output)
    return x_out, gate_logit


if __name__ == "__main__":
    # Small shapes consistent with the module config:
    #   d_in=32, gate_hidden_dims=[64, 32], d_out=16, gate_bias=True, class_dim=8
    N, D_IN = 16, 32
    GATE_HIDDEN_DIMS = [64, 32]
    D_OUT = 16
    CLASS_DIM = 8

    key = jax.random.PRNGKey(0)
    k_x, k1, k2, k3, kc, k_x2 = jax.random.split(key, 6)

    w1, b1 = _init_linear(k1, D_IN, GATE_HIDDEN_DIMS[0])
    w2, b2 = _init_linear(k2, GATE_HIDDEN_DIMS[0], GATE_HIDDEN_DIMS[1])
    w3, b3 = _init_linear(k3, GATE_HIDDEN_DIMS[1], D_OUT)
    wc, bc = _init_linear(kc, GATE_HIDDEN_DIMS[1], CLASS_DIM)
    params = (w1, b1, w2, b2, w3, b3, wc, bc)

    # --- primary small-shape check -------------------------------------------
    x = jax.random.normal(k_x, (N, D_IN), jnp.float32)
    x_out, gate_logit = multi_layer_gate(x, params)
    jax.block_until_ready((x_out, gate_logit))

    ref_x, ref_logit = _reference(x, params)
    assert x_out.shape == (N, D_OUT) and gate_logit.shape == (N, CLASS_DIM)
    assert jnp.allclose(x_out, ref_x, atol=1e-4, rtol=1e-4)
    assert jnp.allclose(gate_logit, ref_logit, atol=1e-4, rtol=1e-4)

    # --- exercise the token grid (multiple tiles + row padding) --------------
    N2 = 200
    x2 = jax.random.normal(k_x2, (N2, D_IN), jnp.float32)
    x_out2, gate_logit2 = multi_layer_gate(x2, params, tm_max=64)
    jax.block_until_ready((x_out2, gate_logit2))

    ref_x2, ref_logit2 = _reference(x2, params)
    assert x_out2.shape == (N2, D_OUT) and gate_logit2.shape == (N2, CLASS_DIM)
    assert jnp.allclose(x_out2, ref_x2, atol=1e-4, rtol=1e-4)
    assert jnp.allclose(gate_logit2, ref_logit2, atol=1e-4, rtol=1e-4)

    print("KERNEL_OK")
</pallas_src>

<mosaic_0001>
module attributes {stable_mosaic.version = 11 : i64} {
  func.func @_gate_kernel(%arg0: i32, %arg1: memref<16x32xf32, #tpu.memory_space<vmem>>, %arg2: memref<32x128xf32, #tpu.memory_space<vmem>>, %arg3: memref<1x128xf32, #tpu.memory_space<vmem>>, %arg4: memref<16x128xf32, #tpu.memory_space<vmem>>) attributes {dimension_semantics = [#tpu.dimension_semantics<parallel>], iteration_bounds = array<i64: 1>, scalar_prefetch = 0 : i64, scratch_operands = 0 : i64, tpu.core_type = #tpu.core_type<tc>, window_params = [{transform_indices = @transform_0, window_bounds = array<i64: 16, 32>}, {pipeline_mode = #tpu.pipeline_mode<synchronous>, transform_indices = @transform_1, window_bounds = array<i64: 32, 128>}, {pipeline_mode = #tpu.pipeline_mode<synchronous>, transform_indices = @transform_2, window_bounds = array<i64: 1, 128>}, {transform_indices = @transform_3, window_bounds = array<i64: 16, 128>}]} {
    %c0 = arith.constant 0 : index
    %c0_0 = arith.constant 0 : index
    %0 = vector.load %arg1[%c0, %c0_0] : memref<16x32xf32, #tpu.memory_space<vmem>>, vector<16x32xf32>
    %c0_1 = arith.constant 0 : index
    %c0_2 = arith.constant 0 : index
    %1 = vector.load %arg2[%c0_1, %c0_2] : memref<32x128xf32, #tpu.memory_space<vmem>>, vector<32x128xf32>
    %cst = arith.constant dense<0.000000e+00> : vector<16x128xf32>
    %2 = tpu.matmul %0, %1, %cst {dimension_numbers = #tpu.dot_dimension_numbers<[1], [0], [0], [1], [0, 0, 1, 1], [], []>} : vector<16x32xf32>, vector<32x128xf32>, vector<16x128xf32> -> vector<16x128xf32>
    %c0_3 = arith.constant 0 : index
    %c0_4 = arith.constant 0 : index
    %3 = vector.load %arg3[%c0_3, %c0_4] : memref<1x128xf32, #tpu.memory_space<vmem>>, vector<1x128xf32>
    %4 = vector.broadcast %3 : vector<1x128xf32> to vector<16x128xf32>
    %5 = arith.addf %2, %4 : vector<16x128xf32>
    %c0_5 = arith.constant 0 : index
    %c0_6 = arith.constant 0 : index
    %6 = vector.load %arg4[%c0_5, %c0_6] : memref<16x128xf32, #tpu.memory_space<vmem>>, vector<16x128xf32>
    tpu.vector_store %arg4[%c0_5, %c0_6], %5 {strides = array<i32>} : memref<16x128xf32, #tpu.memory_space<vmem>>, vector<16x128xf32>,
    return
  }
  func.func @transform_0(%arg0: i32) -> (i32, i32) {
    %c0_i32 = arith.constant 0 : i32
    %c0_i32_0 = arith.constant 0 : i32
    return %arg0, %c0_i32 : i32, i32
  }
  func.func @transform_1(%arg0: i32) -> (i32, i32) {
    %c0_i32 = arith.constant 0 : i32
    %c0_i32_0 = arith.constant 0 : i32
    %c0_i32_1 = arith.constant 0 : i32
    return %c0_i32, %c0_i32_0 : i32, i32
  }
  func.func @transform_2(%arg0: i32) -> (i32, i32) {
    %c0_i32 = arith.constant 0 : i32
    %c0_i32_0 = arith.constant 0 : i32
    %c0_i32_1 = arith.constant 0 : i32
    return %c0_i32, %c0_i32_0 : i32, i32
  }
  func.func @transform_3(%arg0: i32) -> (i32, i32) {
    %c0_i32 = arith.constant 0 : i32
    %c0_i32_0 = arith.constant 0 : i32
    return %arg0, %c0_i32 : i32, i32
  }
}

</mosaic_0001>

<bundles_post_ra>
// kernel: tpu_custom_call.1
= control target key start
LH: loop header
LB: loop body
LE: loop exit
PB: predicated region body
PF: predicated region fallthrough
CT: control target
= control target key end

     0   :  { %8 = vsyncpa [#allocation3], 0  ;;  %s245_s0 = inlined_call_operand.hbm [shape: f32[16,32], index: 0, kind: input, shape index: {}]   ;;  %s246_s1 = inlined_call_operand.hbm [shape: f32[32,128], index: 1, kind: input, shape index: {}]   ;;  %s247_s2 = inlined_call_operand.vmem [shape: f32[1,128], index: 2, kind: input, shape index: {}]   ;;  %s248_s3 = inlined_call_operand.hbm [shape: f32[16,128], index: 3, kind: output, shape index: {}]  }
   0x1   :  { %9 = vsyncpa [#allocation6], 0 }
   0x2   :  { %10 = vsyncpa [#allocation4], 0  ;;  %s15_s14 = sshll.u32 %s245_s0, 4  ;;  %s199_s15 = smov [#allocation2]   ;;  %s16_s14 = int_to_ptr.hbm [resolvable:$true] %s15_s14 }
   0x3   :  { %s17_s16 = sshll.u32 %s199_s15, 4  ;;  %s28_s19 = sshll.u32 %s246_s1, 4  ;;  %s18_s16 = int_to_ptr.vmem [resolvable:$true] %s17_s16  ;;  %s29_s19 = int_to_ptr.hbm [resolvable:$true] %s28_s19 }
   0x4   :  { %s200_s20 = smov 128   ;;  %s201_s21 = smov 8  }
   0x5   :  { %23 = dma.hbm_to_vmem [thread:$0]  %s16_s14, 256, %s18_s16, [#allocation3], %s200_s20, %s200_s20, %s201_s21  }
   0x6   :  { %s202_s22 = smov [#allocation5]  }
   0x7   :  { %s30_s23 = sshll.u32 %s202_s22, 4  ;;  %s31_s23 = int_to_ptr.vmem [resolvable:$true] %s30_s23 }
   0x8   :  { %36 = dma.hbm_to_vmem [thread:$0]  %s29_s19, 512, %s31_s23, [#allocation6], %s200_s20, %s200_s20, %s201_s21  }
   0x9   :  { %193 = dma.done.wait [#allocation3], 256  }
   0xa   :  { %194 = vsyncadd [#allocation3], 4294967040 }
   0xb   :  { %195 = dma.done.wait [#allocation6], 512  }
   0xc   :  { %196 = vsyncadd [#allocation6], 4294966784  ;;  %v52_v0 = vld [vmem:[#allocation5 + $0x18] sm:$0xff]  ;;  %v51_v1 = vld [vmem:[#allocation5 + $0x10] sm:$0xff]  ;;  %vm57_vm0 = vcmask 261120   ;;  %s203_s24 = smov [#allocation7]  }
   0xd   :  { %76 = vmatpush.msra.mxu0 %v52_v0  ;;  %111 = vmatpush.msra.mxu1 %v52_v0  ;;  %v50_v2 = vld [vmem:[#allocation5 + $0x8] sm:$0xff]  ;;  %v49_v3 = vld [vmem:[#allocation5] sm:$0xff]  ;;  %v47_v4 = vld [vmem:[#allocation2] sm:$0xff]  ;;  %s93_s25 = sshll.u32 %s203_s24, 4  ;;  %s95_s28 = sshll.u32 %s248_s3, 4  ;;  %s94_s25 = int_to_ptr.vmem [resolvable:$true] %s93_s25  ;;  %s96_s28 = int_to_ptr.hbm [resolvable:$true] %s95_s28 }
   0xe   :  { %v48_v5 = vld [vmem:[#allocation2 + $0x8] sm:$0xff]  ;;  %v120_v6 = vld [vmem:[%s247_s2] ss:$0 sm:$0xff] }
   0xf   :  { %77 = vmatpush.msra.mxu0 %v51_v1  ;;  %112 = vmatpush.msra.mxu1 %v51_v1 }
  0x11   :  { %78 = vmatpush.msra.mxu0 %v50_v2  ;;  %113 = vmatpush.msra.mxu1 %v50_v2 }
  0x13   :  { %79 = vmatpush.msra.mxu0 %v49_v3  ;;  %114 = vmatpush.msra.mxu1 %v49_v3 }
  0x14   :  { %109 = vmatmul.msk.f32.vlgmr.msra.gmra.mxu0 %vm57_vm0, %v47_v4  ;;  %110 = vmatmul.msk.f32.vlgmr.msra.gmra.mxu1 %vm57_vm0, %v48_v5 }
  0x91   :  { %v81_v7 = vpop.f32.mrf.mxu0  ;;  %v84_v8 = vpop.f32.mrf.mxu1 }
  0x92   :  { %v82_v9 = vadd.f32 %v120_v6, %v81_v7  ;;  %v85_v10 = vadd.f32 %v120_v6, %v84_v8 }
  0x94   :  { %87 = vst [vmem:[#allocation7] sm:$0xff] %v82_v9 }
  0x95   :  { %88 = vst [vmem:[#allocation7 + $0x8] sm:$0xff] %v85_v10 }
  0x96   :  { %101 = dma.vmem_to_hbm [thread:$0]  %s94_s25, 256, %s96_s28, [#allocation4], %s200_s20, %s200_s20, %s201_s21  }
  0x97   :  { %197 = dma.done.wait [#allocation4], 256  }
  0x98   :  { %198 = vsyncadd [#allocation4], 4294967040 }
  0x99   :  { %106 = vsyncpa [#allocation3], 1 }
  0x9a   :  { %107 = vsyncpa [#allocation6], 1 }
  0x9b   :  { %108 = vsyncpa [#allocation4], 1 }

</bundles_post_ra>
